<compile_context>
chip_gen: v6e
topology: v6e:2x2x1
jax: 0.10.0
libtpu: 0.0.40
codegen_flags: <defaults>
</compile_context>

<pallas_src>
import jax
import jax.numpy as jnp
from jax.experimental import pallas as pl
from jax.experimental.pallas import tpu as pltpu


def _round_up(a, b):
    return ((a + b - 1) // b) * b


def _vmem_capacity_bytes():
    """Physical VMEM per core; conservative fallback (v7x = 64 MiB)."""
    try:
        cap = int(pltpu.get_tpu_info().vmem_capacity_bytes)
        if cap > 0:
            return cap
    except Exception:
        pass
    return 64 << 20


def _choose_tile(dim_pad, target, align):
    """Largest multiple of `align` that divides dim_pad and is <= target.

    dim_pad is already a multiple of `align`, so this never forces extra
    padding of the array (the grid stays exact)."""
    if dim_pad <= target:
        return dim_pad
    best = align
    t = align
    while t <= target:
        if dim_pad % t == 0:
            best = t
        t += align
    return best


def _conv1d_kernel_fullk(x_ref, w_ref, b_ref, o_ref):
    # Full-K fast path. Grid = (N tiles, M tiles); the W index map ignores the
    # inner M axis, so each W tile stays resident in VMEM across the M sweep
    # and is fetched from HBM exactly once.
    acc = jnp.dot(
        x_ref[...].astype(w_ref.dtype), w_ref[...],
        preferred_element_type=jnp.float32,
    )
    o_ref[...] = (acc + b_ref[...]).astype(o_ref.dtype)


def _conv1d_kernel_ksplit(x_ref, w_ref, b_ref, o_ref, acc_ref):
    # Grid = (M tiles, N tiles, K tiles); K MUST stay innermost ("arbitrary").
    k = pl.program_id(2)

    @pl.when(k == 0)
    def _():
        # Fold the bias into the accumulator init: saves a full-tile VPU add
        # on the last-K step, which already carries the cast + store.
        acc_ref[...] = jnp.broadcast_to(b_ref[...], acc_ref.shape)

    acc_ref[...] += jnp.dot(
        x_ref[...].astype(w_ref.dtype), w_ref[...],
        preferred_element_type=jnp.float32,
    )

    @pl.when(k == pl.num_programs(2) - 1)
    def _():
        o_ref[...] = acc_ref[...].astype(o_ref.dtype)


def conv1d(x, weight, bias, *, tm=512, tn=1024, tk=None,
           compute_dtype=None, out_dtype=None):
    """GPT-2 Conv1D forward: x[..., nx] @ weight[nx, nf] + bias[nf].

    tm/tn: M / N tile targets. tk: reduction tile (None = full K when the
    weight tile fits VMEM, else 512). compute_dtype (e.g. bf16) narrows the
    MXU inputs with f32 accumulation; out_dtype overrides the output dtype.
    """
    *lead, nx = x.shape
    nf = weight.shape[-1]
    out_dtype = x.dtype if out_dtype is None else out_dtype

    x2d = x.reshape(-1, nx)
    m = x2d.shape[0]

    # Only pre-cast the weight (amortized across calls); activations are cast
    # inside the kernel to avoid an extra HBM read+write pass over X.
    if compute_dtype is not None:
        weight = weight.astype(compute_dtype)

    x_item = jnp.dtype(x2d.dtype).itemsize
    w_item = jnp.dtype(weight.dtype).itemsize
    o_item = jnp.dtype(out_dtype).itemsize

    sub = 8 if x_item >= 4 else 16   # sublane granularity for the M axis
    lane = 128

    cap = _vmem_capacity_bytes()
    budget = max(24 << 20, cap * 3 // 4)   # leave headroom for compiler temps

    # Pad K and N only to lane granularity (never to a full tile).
    k_pad = _round_up(nx, lane)
    n_pad = _round_up(nf, lane)

    # M tile: clamp to the problem, pad M up to the tile (waste <= tm-1 rows).
    tm_eff = max(sub, min(_round_up(tm, sub), _round_up(m, sub)))
    m_pad = _round_up(m, tm_eff)

    # N tile: a divisor of n_pad (no extra N padding).
    tn_eff = _choose_tile(n_pad, max(lane, tn), lane)

    # Keep >= 2 independent (M, N) tiles when possible so both v7x TensorCores
    # get work instead of a degenerate (1, 1) parallel grid.
    if (m_pad // tm_eff) * (n_pad // tn_eff) == 1 and m_pad % (2 * sub) == 0:
        tm_eff = m_pad // 2

    def footprint(tk_, with_acc):
        f = 2 * (tm_eff * tk_ * x_item + tk_ * tn_eff * w_item
                 + tn_eff * 4 + tm_eff * tn_eff * o_item)
        if with_acc:
            f += tm_eff * tn_eff * 4
        return f

    # K strategy: weight-resident full-K fast path when it fits the budget.
    use_fullk = (tk is None or tk >= k_pad) and footprint(k_pad, False) <= budget
    if use_fullk:
        tk_eff = k_pad
    else:
        tk_target = 512 if tk is None else max(lane, _round_up(tk, lane))
        tk_eff = _choose_tile(k_pad, tk_target, lane)
        # Safety: shrink K tile if the user asked for something that busts VMEM.
        while footprint(tk_eff, True) > budget and tk_eff > lane:
            nxt = tk_eff - lane
            while nxt > lane and k_pad % nxt != 0:
                nxt -= lane
            tk_eff = max(lane, nxt)

    # Pad the operands (zero K-padding is exact for matmul).
    if (m_pad, k_pad) != x2d.shape:
        x2d = jnp.pad(x2d, ((0, m_pad - m), (0, k_pad - nx)))
    w2d = weight
    if (k_pad, n_pad) != w2d.shape:
        w2d = jnp.pad(w2d, ((0, k_pad - nx), (0, n_pad - nf)))
    b2d = bias.astype(jnp.float32).reshape(1, nf)
    if n_pad != nf:
        b2d = jnp.pad(b2d, ((0, 0), (0, n_pad - nf)))

    # VMEM limit: enough for the tiles, never above the physical capacity.
    vmem_limit = int(min(cap, max(footprint(tk_eff, not use_fullk) + (4 << 20),
                                  32 << 20)))

    cost = pl.CostEstimate(
        flops=2 * m_pad * k_pad * n_pad,
        transcendentals=0,
        bytes_accessed=(m_pad * k_pad * x_item + k_pad * n_pad * w_item
                        + n_pad * 4 + m_pad * n_pad * o_item),
    )

    if use_fullk:
        grid = (n_pad // tn_eff, m_pad // tm_eff)   # N outer, M inner
        out2d = pl.pallas_call(
            _conv1d_kernel_fullk,
            out_shape=jax.ShapeDtypeStruct((m_pad, n_pad), out_dtype),
            grid_spec=pltpu.PrefetchScalarGridSpec(
                num_scalar_prefetch=0,
                grid=grid,
                in_specs=[
                    pl.BlockSpec((tm_eff, k_pad), lambda j, i: (i, 0)),   # X
                    pl.BlockSpec((k_pad, tn_eff), lambda j, i: (0, j)),   # W
                    pl.BlockSpec((1, tn_eff), lambda j, i: (0, j)),       # bias
                ],
                out_specs=pl.BlockSpec((tm_eff, tn_eff), lambda j, i: (i, j)),
            ),
            compiler_params=pltpu.CompilerParams(
                dimension_semantics=("parallel", "parallel"),
                vmem_limit_bytes=vmem_limit,
            ),
            cost_estimate=cost,
        )(x2d, w2d, b2d)
    else:
        grid = (m_pad // tm_eff, n_pad // tn_eff, k_pad // tk_eff)
        out2d = pl.pallas_call(
            _conv1d_kernel_ksplit,
            out_shape=jax.ShapeDtypeStruct((m_pad, n_pad), out_dtype),
            grid_spec=pltpu.PrefetchScalarGridSpec(
                num_scalar_prefetch=0,
                grid=grid,
                in_specs=[
                    pl.BlockSpec((tm_eff, tk_eff), lambda i, j, k: (i, k)),  # X
                    pl.BlockSpec((tk_eff, tn_eff), lambda i, j, k: (k, j)),  # W
                    pl.BlockSpec((1, tn_eff), lambda i, j, k: (0, j)),       # bias
                ],
                out_specs=pl.BlockSpec((tm_eff, tn_eff), lambda i, j, k: (i, j)),
                scratch_shapes=[pltpu.VMEM((tm_eff, tn_eff), jnp.float32)],
            ),
            compiler_params=pltpu.CompilerParams(
                dimension_semantics=("parallel", "parallel", "arbitrary"),
                vmem_limit_bytes=vmem_limit,
            ),
            cost_estimate=cost,
        )(x2d, w2d, b2d)

    out2d = out2d[:m, :nf]
    return out2d.reshape(*lead, nf)


def _ref_conv1d(x, w, b):
    *lead, nx = x.shape
    return (x.reshape(-1, nx) @ w + b).reshape(*lead, w.shape[1])


if __name__ == "__main__":
    key = jax.random.PRNGKey(0)
    k1, k2, k3, k4, k5, k6, k7 = jax.random.split(key, 7)

    # 1) Module-faithful small shapes (Conv1D(nf, nx): weight N(0, 0.02), bias=0).
    batch, seq, nx, nf = 2, 8, 32, 64
    x = jax.random.normal(k1, (batch, seq, nx), dtype=jnp.float32)
    weight = 0.02 * jax.random.normal(k2, (nx, nf), dtype=jnp.float32)
    bias = jnp.zeros((nf,), dtype=jnp.float32)

    out = conv1d(x, weight, bias)
    jax.block_until_ready(out)
    ref = _ref_conv1d(x, weight, bias)
    assert out.shape == (batch, seq, nf)
    assert jnp.allclose(out, ref, atol=1e-5, rtol=1e-5)

    # 2) Awkward (non-lane-multiple) shapes + nonzero bias -> exercises padding.
    b2, s2, nx2, nf2 = 3, 5, 40, 72
    x2 = jax.random.normal(k3, (b2, s2, nx2), dtype=jnp.float32)
    w2 = 0.02 * jax.random.normal(k4, (nx2, nf2), dtype=jnp.float32)
    bias2 = 0.1 * jax.random.normal(k5, (nf2,), dtype=jnp.float32)

    out2 = conv1d(x2, w2, bias2)
    jax.block_until_ready(out2)
    ref2 = _ref_conv1d(x2, w2, bias2)
    assert out2.shape == (b2, s2, nf2)
    assert jnp.allclose(out2, ref2, atol=1e-4, rtol=1e-4)

    # 3) bf16 MXU path (in-kernel X cast, f32 accumulation + f32 bias add).
    out3 = conv1d(x, weight, bias, compute_dtype=jnp.bfloat16)
    jax.block_until_ready(out3)
    assert jnp.allclose(out3, ref, atol=1e-2, rtol=2e-2)

    # 4) Force the K-split accumulator path (tk < K) + nonzero bias.
    b4, s4, nx4, nf4 = 2, 16, 256, 384
    x4 = jax.random.normal(k6, (b4, s4, nx4), dtype=jnp.float32)
    w4 = 0.02 * jax.random.normal(k7, (nx4, nf4), dtype=jnp.float32)
    bias4 = 0.1 * jnp.arange(nf4, dtype=jnp.float32) / nf4
    out4 = conv1d(x4, w4, bias4, tk=128)
    jax.block_until_ready(out4)
    ref4 = _ref_conv1d(x4, w4, bias4)
    assert out4.shape == (b4, s4, nf4)
    assert jnp.allclose(out4, ref4, atol=1e-4, rtol=1e-4)

    print("KERNEL_OK")
</pallas_src>

<mosaic_0001>
module attributes {stable_mosaic.version = 11 : i64} {
  func.func @_conv1d_kernel_fullk(%arg0: i32, %arg1: i32, %arg2: memref<8x128xf32, #tpu.memory_space<vmem>>, %arg3: memref<128x128xf32, #tpu.memory_space<vmem>>, %arg4: memref<1x128xf32, #tpu.memory_space<vmem>>, %arg5: memref<8x128xf32, #tpu.memory_space<vmem>>) attributes {dimension_semantics = [#tpu.dimension_semantics<parallel>, #tpu.dimension_semantics<parallel>], iteration_bounds = array<i64: 1, 2>, scalar_prefetch = 0 : i64, scratch_operands = 0 : i64, tpu.core_type = #tpu.core_type<tc>, window_params = [{transform_indices = @transform_0, window_bounds = array<i64: 8, 128>}, {transform_indices = @transform_1, window_bounds = array<i64: 128, 128>}, {transform_indices = @transform_2, window_bounds = array<i64: 1, 128>}, {transform_indices = @transform_3, window_bounds = array<i64: 8, 128>}]} {
    %c0 = arith.constant 0 : index
    %c0_0 = arith.constant 0 : index
    %0 = vector.load %arg2[%c0, %c0_0] : memref<8x128xf32, #tpu.memory_space<vmem>>, vector<8x128xf32>
    %c0_1 = arith.constant 0 : index
    %c0_2 = arith.constant 0 : index
    %1 = vector.load %arg3[%c0_1, %c0_2] : memref<128x128xf32, #tpu.memory_space<vmem>>, vector<128x128xf32>
    %cst = arith.constant dense<0.000000e+00> : vector<8x128xf32>
    %2 = tpu.matmul %0, %1, %cst {dimension_numbers = #tpu.dot_dimension_numbers<[1], [0], [0], [1], [0, 0, 1, 1], [], []>} : vector<8x128xf32>, vector<128x128xf32>, vector<8x128xf32> -> vector<8x128xf32>
    %c0_3 = arith.constant 0 : index
    %c0_4 = arith.constant 0 : index
    %3 = vector.load %arg4[%c0_3, %c0_4] : memref<1x128xf32, #tpu.memory_space<vmem>>, vector<1x128xf32>
    %4 = vector.broadcast %3 : vector<1x128xf32> to vector<8x128xf32>
    %5 = arith.addf %2, %4 : vector<8x128xf32>
    %c0_5 = arith.constant 0 : index
    %c0_6 = arith.constant 0 : index
    %6 = vector.load %arg5[%c0_5, %c0_6] : memref<8x128xf32, #tpu.memory_space<vmem>>, vector<8x128xf32>
    tpu.vector_store %arg5[%c0_5, %c0_6], %5 {strides = array<i32>} : memref<8x128xf32, #tpu.memory_space<vmem>>, vector<8x128xf32>,
    return
  }
  func.func @transform_0(%arg0: i32, %arg1: i32) -> (i32, i32) {
    %c0_i32 = arith.constant 0 : i32
    %c0_i32_0 = arith.constant 0 : i32
    return %arg1, %c0_i32 : i32, i32
  }
  func.func @transform_1(%arg0: i32, %arg1: i32) -> (i32, i32) {
    %c0_i32 = arith.constant 0 : i32
    %c0_i32_0 = arith.constant 0 : i32
    return %c0_i32, %arg0 : i32, i32
  }
  func.func @transform_2(%arg0: i32, %arg1: i32) -> (i32, i32) {
    %c0_i32 = arith.constant 0 : i32
    %c0_i32_0 = arith.constant 0 : i32
    return %c0_i32, %arg0 : i32, i32
  }
  func.func @transform_3(%arg0: i32, %arg1: i32) -> (i32, i32) {
    %c0_i32 = arith.constant 0 : i32
    return %arg1, %arg0 : i32, i32
  }
}

</mosaic_0001>

<bundles_post_ra>
// kernel: tpu_custom_call.1
= control target key start
LH: loop header
LB: loop body
LE: loop exit
PB: predicated region body
PF: predicated region fallthrough
CT: control target
= control target key end

     0   :  { %8 = vsyncpa [#allocation3], 0  ;;  %s945_s0 = inlined_call_operand.hbm [shape: f32[16,128], index: 0, kind: input, shape index: {}]   ;;  %s946_s1 = inlined_call_operand.hbm [shape: f32[128,128], index: 1, kind: input, shape index: {}]   ;;  %s947_s2 = inlined_call_operand.vmem [shape: f32[1,128], index: 2, kind: input, shape index: {}]   ;;  %s948_s3 = inlined_call_operand.hbm [shape: f32[16,128], index: 3, kind: output, shape index: {}]  }
   0x1   :  { %10 = vsyncpa [#allocation3 + $0x1], 0 }
   0x2   :  { %11 = vsyncpa [#allocation6], 0 }
   0x3   :  { %12 = vsyncpa [#allocation4], 0 }
   0x4   :  { %14 = vsyncpa [#allocation4 + $0x1], 0  ;;  %s762_s12 = smov 0   ;;  %s764_s13 = smov 0  }
   0x5   :  { %s766_s14 = smov 0   ;;  %s768_s15 = smov 0  }
   0x6   :  { %s770_s16 = smov 0   ;;  %s772_s17 = smov 0  }
   0x7 LB: > { %s449_s18 = sadd.s32 4294967295, %s733_s17   ;;  %s450_s19 = sadd.s32 4294967294, %s733_s17   ;;  %s733_s17 = sphi %s772_s17, %s20_s17   ;;  %s729_s16 = sphi %s770_s16, %s966_s16   ;;  %s725_s15 = sphi %s768_s15, %s965_s15   ;;  %s721_s14 = sphi %s766_s14, %s964_s14   ;;  %s717_s13 = sphi %s764_s13, %s963_s13   ;;  %s713_s12 = sphi %s762_s12, %s962_s12  }
   0x8   : > { %p52_p0 = scmp.ne.s32.totalorder %s717_s13, %s713_s12  ;;  %p796_p1 = scmp.eq.s32.totalorder %s449_s18, 0 }
   0x9   : > { %p800_p2 = scmp.eq.s32.totalorder %s449_s18, 1  ;;  %p136_p3 = scmp.eq.s32.totalorder %s450_s19, 1 }
   0xa   : > { %p806_p4 = por %p796_p1, %p52_p0  ;;  %p451_p5 = scmp.ge.s32.totalorder %s733_s17, 1 }
   0xb   : > { %p811_p6 = por %p136_p3, %p52_p0  ;;  %p143_p7 = scmp.lt.s32.totalorder %s733_s17, 3 }
   0xc   : > { %s952_s22 = scalar_select %p806_p4, 1, 0 }
   0xd   : > { %s953_s23 = scalar_select %p811_p6, 1, 0 }
   0xe   : > { %p816_p8 = pnand %p451_p5, %p143_p7  ;;  %s735_s25 = smov [#allocation5]  }
   0xf   : > { %s157_s26 = sshll.u32 %s735_s25, 4  ;;  %s29_s28 = sadd.s32 1, %s729_s16  ;;  %s158_s26 = int_to_ptr.vmem [resolvable:$true] %s157_s26 }
  0x10   : > { %p526_p9 = pneg %p816_p8  ;;  %s606_s29 = scalar_lea.vmem %s158_s26, 2048 }
  0x11   : > { %p607_p13 = scmp.ne.s32.totalorder %s158_s26, %s606_s29  ;;  %p614_p5 = scmp.lt.s32.totalorder %s158_s26, %s158_s26 }
  0x12   : > { %p825_p11 = pnand %p526_p9, %p796_p1  ;;  %p615_p7 = scmp.lt.s32.totalorder %s606_s29, %s606_s29 }
  0x14   : > { %p597_p12 = pneg %p825_p11  ;;  %p616_p6 = por %p615_p7, %p614_p5 }
  0x16   : > { %p609_p0 = pnand %p607_p13, %p597_p12 }
  0x18   : > { %p610_p3 = pneg %p609_p0 }
  0x1a   : > { %p617_p4 = pnand %p616_p6, %p610_p3 }
  0x1c   : > { %620 = shalt.err (!%p617_p4)
}
  0x1d   : > { %s736_s30 = smov 128   ;;  %s737_s4 = smov 8  }
  0x1e   : > { %529 = dma.hbm_to_vmem [thread:$0]  (!%p825_p11), %s946_s1, 2048, %s158_s26, [#allocation6], %s736_s30, %s736_s30, %s737_s4  }
  0x1f   : > { %p30_p6 = scmp.ge.s32.totalorder %s29_s28, 2  ;;  %s39_s7 = sadd.s32 1, %s721_s14 }
  0x20   : > { %p46_p4 = scmp.ne.s32.totalorder %s721_s14, %s717_s13  ;;  %p47_p9 = scmp.eq.s32.totalorder %s733_s17, 0 }
  0x21   : > { %s968_s28 = smov (%p30_p6, %s29_s28), 0  ;;  %p539_p0 = scmp.lt.s32.totalorder %s733_s17, 2 }
  0x22   : > { %p843_p12 = por %p47_p9, %p46_p4  ;;  %p849_p13 = por %p800_p2, %p46_p4 }
  0x23   : > { %s36_s10 = ssub.s32 %s729_s16, %s968_s28  ;;  %s177_s11 = sand.u32 1, %s721_s14  }
  0x24   : > { %p37_p11 = scmp.eq.s32.totalorder %s36_s10, 0  ;;  %s455_s18 = sshll.u32 %s177_s11, 3 }
  0x25   : > { %s456_s25 = sshll.u32 %s729_s16, 7  ;;  %s181_s30 = scalar_lea.vmem [#allocation2], %s455_s18 }
  0x26   : > { %s858_s19 = scalar_select %p37_p11, %s721_s14, %s39_s7  }
  0x27   : > { %s186_s29 = scalar_lea.hbm %s945_s0, %s456_s25  ;;  %s188_s4 = sshll.u32 %s181_s30, 4  ;;  %s189_s4 = int_to_ptr.vmem [resolvable:$true] %s188_s4 }
  0x28   : > { %p866_p2 = pnand %p539_p0, %p843_p12  ;;  %s178_s5 = scalar_lea.sflag [#allocation3], %s177_s11 }
  0x29   : > { %s634_s6 = scalar_lea.vmem %s189_s4, 128  ;;  %s738_s7 = smov [#allocation2]  }
  0x2a   : > { %p623_p3 = pneg %p866_p2  ;;  %p635_p5 = scmp.ne.s32.totalorder %s189_s4, %s634_s6 }
  0x2b   : > { %s639_s10 = sshll.u32 %s738_s7, 4  ;;  %s640_s10 = int_to_ptr.vmem [resolvable:$false] %s639_s10 }
  0x2c   : > { %p637_p7 = pnand %p635_p5, %p623_p3  ;;  %s641_s25 = scalar_lea.vmem %s640_s10, 256 }
  0x2d   : > { %p642_p4 = scmp.lt.s32.totalorder %s189_s4, %s640_s10  ;;  %p643_p9 = scmp.lt.s32.totalorder %s641_s25, %s634_s6 }
  0x2e   : > { %p638_p6 = pneg %p637_p7 }
  0x2f   : > { %p644_p11 = por %p643_p9, %p642_p4 }
  0x31   : > { %p645_p10 = pnand %p644_p11, %p638_p6 }
  0x33   : > { %648 = shalt.err (!%p645_p10)
}
  0x34   : > { %533 = dma.hbm_to_vmem [thread:$0]  (!%p866_p2), %s186_s29, 128, %s189_s4, %s178_s5  }
  0x35   : > { %197 = sbr.rel (%p816_p8) target bundleno = 302 (0x12e), region = 32  ;;  %s877_s8 = sand.u32 (!%p816_p8), 1, %s717_s13  }
  0x36   : > { %s458_s11 = sshll.u32 (!%p816_p8), %s877_s8, 3  ;;  %s200_s18 = scalar_lea.sflag (!%p816_p8), [#allocation3], %s877_s8 }
  0x37   : > { %s883_s26 = scalar_lea.vmem (!%p816_p8), [#allocation2], %s458_s11  ;;  %p959_p12 = scmp.ne.s32.totalorder (!%p816_p8), %s952_s22, 0 }
  0x3a   : > { %700 = dma.done.wait (%p959_p12), %s200_s18, 128  }
  0x3b   : > { %702 = vsyncadd (%p959_p12), %s200_s18, 4294967168 }
  0x3c   : > { %704 = dma.done.wait (%p796_p1), [#allocation6], 2048  }
  0x3d   : > { %706 = vsyncadd (%p796_p1), [#allocation6], 4294965248  ;;  %v739_v0 = vmov 0.0   ;;  %vm740_vm0 = vmmov 0   ;;  %v252_v1 = vld [vmem:[#allocation5 + $0x78] sm:$0xff]  ;;  %v251_v2 = vld [vmem:[#allocation5 + $0x70] sm:$0xff] }
  0x3e   : > { %483 = vmatprep.subr.mxu0 %v739_v0  ;;  %515 = vmatprep.mubr.msk.f32.mxu0 %vm740_vm0, %v739_v0  ;;  %v250_v3 = vld [vmem:[#allocation5 + $0x68] sm:$0xff]  ;;  %v249_v4 = vld [vmem:[#allocation5 + $0x60] sm:$0xff]  ;;  %v248_v5 = vld [vmem:[#allocation5 + $0x58] sm:$0xff]  ;;  %s463_s24 = sshll.u32 %s725_s15, 7  ;;  %s232_s27 = scalar_lea.vmem [#allocation7], %s458_s11 }
  0x3f   : > { %484 = vmatpush3.msra.mxu0 %v252_v1  ;;  %v247_v6 = vld [vmem:[#allocation5 + $0x50] sm:$0xff]  ;;  %v246_v7 = vld [vmem:[#allocation5 + $0x48] sm:$0xff]  ;;  %v245_v8 = vld [vmem:[#allocation5 + $0x40] sm:$0xff]  ;;  %s346_s29 = sshll.u32 %s232_s27, 4  ;;  %s903_s21 = scalar_lea.hbm %s948_s3, %s463_s24  ;;  %s347_s29 = int_to_ptr.vmem [resolvable:$true] %s346_s29 }
  0x40   : > { %485 = vmatprep.subr.mxu0 %v739_v0  ;;  %v244_v9 = vld [vmem:[#allocation5 + $0x38] sm:$0xff]  ;;  %v243_v10 = vld [vmem:[#allocation5 + $0x30] sm:$0xff]  ;;  %v242_v11 = vld [vmem:[#allocation5 + $0x28] sm:$0xff]  ;;  %s332_s5 = scalar_lea.sflag [#allocation4], %s877_s8  ;;  %s649_s6 = scalar_lea.vmem %s347_s29, 128 }
  0x41   : > { %486 = vmatpush3.msra.mxu0 %v251_v2  ;;  %v241_v12 = vld [vmem:[#allocation5 + $0x20] sm:$0xff]  ;;  %v240_v13 = vld [vmem:[#allocation5 + $0x18] sm:$0xff]  ;;  %v239_v14 = vld [vmem:[#allocation5 + $0x10] sm:$0xff]  ;;  %p650_p1 = scmp.ne.s32.totalorder %s347_s29, %s649_s6  ;;  %s741_s15 = smov [#allocation7]  }
  0x42   : > { %487 = vmatprep.subr.mxu0 %v739_v0  ;;  %v238_v15 = vld [vmem:[#allocation5 + $0x8] sm:$0xff]  ;;  %v237_v16 = vld [vmem:[#allocation5] sm:$0xff]  ;;  %v236_v17 = vld [vmem:[%s883_s26] sm:$0xff]  ;;  %s653_s7 = sshll.u32 %s741_s15, 4  ;;  %s654_s7 = int_to_ptr.vmem [resolvable:$false] %s653_s7 }
  0x43   : > { %488 = vmatpush3.msra.mxu0 %v250_v3  ;;  %v461_v18 = vld [vmem:[%s947_s2] ss:$0 sm:$0xff]  ;;  %p651_p8 = pnand %p650_p1, %p849_p13  ;;  %s655_s10 = scalar_lea.vmem %s654_s7, 256 }
  0x44   : > { %489 = vmatprep.subr.mxu0 %v739_v0  ;;  %p656_p0 = scmp.lt.s32.totalorder %s347_s29, %s654_s7  ;;  %p657_p2 = scmp.lt.s32.totalorder %s655_s10, %s649_s6 }
  0x45   : > { %490 = vmatpush3.msra.mxu0 %v249_v4  ;;  %p652_p10 = pneg %p651_p8 }
  0x46   : > { %491 = vmatprep.subr.mxu0 %v739_v0  ;;  %p658_p3 = por %p657_p2, %p656_p0 }
  0x47   : > { %492 = vmatpush3.msra.mxu0 %v248_v5 }
  0x48   : > { %493 = vmatprep.subr.mxu0 %v739_v0  ;;  %p659_p5 = pnand %p658_p3, %p652_p10 }
  0x49   : > { %494 = vmatpush3.msra.mxu0 %v247_v6 }
  0x4a   : > { %495 = vmatprep.subr.mxu0 %v739_v0 }
  0x4b   : > { %496 = vmatpush3.msra.mxu0 %v246_v7 }
  0x4c   : > { %497 = vmatprep.subr.mxu0 %v739_v0 }
  0x4d   : > { %498 = vmatpush3.msra.mxu0 %v245_v8 }
  0x4e   : > { %499 = vmatprep.subr.mxu0 %v739_v0 }
  0x4f   : > { %500 = vmatpush3.msra.mxu0 %v244_v9 }
  0x50   : > { %501 = vmatprep.subr.mxu0 %v739_v0 }
  0x51   : > { %502 = vmatpush3.msra.mxu0 %v243_v10 }
  0x52   : > { %503 = vmatprep.subr.mxu0 %v739_v0 }
  0x53   : > { %504 = vmatpush3.msra.mxu0 %v242_v11 }
  0x54   : > { %505 = vmatprep.subr.mxu0 %v739_v0 }
  0x55   : > { %506 = vmatpush3.msra.mxu0 %v241_v12 }
  0x56   : > { %507 = vmatprep.subr.mxu0 %v739_v0 }
  0x57   : > { %508 = vmatpush3.msra.mxu0 %v240_v13 }
  0x58   : > { %509 = vmatprep.subr.mxu0 %v739_v0 }
  0x59   : > { %510 = vmatpush3.msra.mxu0 %v239_v14 }
  0x5a   : > { %511 = vmatprep.subr.mxu0 %v739_v0 }
  0x5b   : > { %512 = vmatpush3.msra.mxu0 %v238_v15 }
  0x5c   : > { %513 = vmatprep.subr.mxu0 %v739_v0 }
  0x5d   : > { %514 = vmatpush3.msra.mxu0 %v237_v16 }
  0x5e   : > { %516 = vmatmul.mubr.f32.vlgmr.msra.gmra.mxu0 %v236_v17 }
 0x11e   : > { %v326_v19 = vpop.f32.mrf.mxu0 }
 0x11f   : > { %v327_v20 = vadd.f32 %v461_v18, %v326_v19 }
 0x120   : > { %v517_v21 = vpop.f32.mrf.mxu0 }
 0x121   : > { %330 = vst [vmem:[%s232_s27] sm:$0xff] %v327_v20 }
 0x122   : > { %662 = shalt.err (!%p659_p5)
}
 0x123   : > { %s663_s25 = scalar_lea.hbm %s903_s21, 128  ;;  %s667_s18 = scalar_lea.hbm %s948_s3, 256 }
 0x124   : > { %p664_p7 = scmp.ne.s32.totalorder %s903_s21, %s663_s25  ;;  %p668_p9 = scmp.lt.s32.totalorder %s903_s21, %s948_s3 }
 0x125   : > { %p669_p11 = scmp.lt.s32.totalorder %s667_s18, %s663_s25 }
 0x126   : > { %p665_p6 = pnand %p664_p7, %p849_p13 }
 0x127   : > { %p670_p12 = por %p669_p11, %p668_p9 }
 0x128   : > { %p666_p4 = pneg %p665_p6 }
 0x12a   : > { %p671_p1 = pnand %p670_p12, %p666_p4 }
 0x12c   : > { %674 = shalt.err (!%p671_p1)
}
 0x12d   : > { %524 = dma.vmem_to_hbm [thread:$0]  (%p849_p13), %s347_s29, 128, %s903_s21, %s332_s5  }
 0x12e PF: > { %s358_s22 = sand.u32 1, %s713_s12   ;;  %p960_p8 = scmp.ne.s32.totalorder %s953_s23, 0 }
 0x12f   : > { %p961_p10 = scmp.ge.s32.totalorder %s733_s17, 2  ;;  %s359_s24 = scalar_lea.sflag [#allocation4], %s358_s22 }
 0x131   : > { %p535_p0 = pnand %p961_p10, %p960_p8 }
 0x133   : > { %p536_p2 = pneg %p535_p0 }
 0x135   : > { %708 = dma.done.wait (%p536_p2), %s359_s24, 128  }
 0x136   : > { %710 = vsyncadd (%p536_p2), %s359_s24, 4294967168  ;;  %s20_s17 = sadd.s32 1, %s733_s17   ;;  %s962_s12 = smov %s717_s13 }
 0x137   : > { %p17_p3 = scmp.ge.s32.totalorder %s20_s17, 4   ;;  %s963_s13 = smov %s721_s14 }
 0x138   : > { %s964_s14 = smov %s858_s19  ;;  %s965_s15 = smov %s729_s16 }
 0x139   : > { %s966_s16 = smov %s968_s28  ;;  %19 = sbr.rel (!%p17_p3) target bundleno = 7 (0x7), region = 85 }
 0x13e   :  { %364 = vsyncpa [#allocation3], 1 }
 0x13f   :  { %366 = vsyncpa [#allocation3 + $0x1], 1 }
 0x140   :  { %367 = vsyncpa [#allocation6], 1 }
 0x141   :  { %368 = vsyncpa [#allocation4], 1 }
 0x142   :  { %370 = vsyncpa [#allocation4 + $0x1], 1 }

</bundles_post_ra>
